<compile_context>
chip_gen: v7x
topology: tpu7x:2x2x1
jax: 0.10.0
libtpu: 0.0.40
codegen_flags: <defaults>
</compile_context>

<pallas_src>
import functools

import jax
import jax.numpy as jnp
from jax import lax
from jax.experimental import pallas as pl
from jax.experimental.pallas import tpu as pltpu


def _round_up(x, m):
    return ((x + m - 1) // m) * m


def _vmem_limit_bytes():
    # Physical VMEM: 128 MiB on v5e/v6e, 64 MiB per TC on v7x. Leave headroom for the
    # Mosaic internal scratch that materializes h.
    try:
        cap = pltpu.get_tpu_info().vmem_capacity_bytes
    except Exception:
        cap = 64 * 1024 * 1024
    return min(int(cap * 0.8), 100 * 1024 * 1024)


# ---------------------------------------------------------------------------
# Kernels
# ---------------------------------------------------------------------------

def _ffn_resident_kernel(x_ref, w1_ref, b1_ref, w2_ref, b2_ref, o_ref, acc_ref,
                         *, tk_inner, n_chunks):
    # x_ref:  (tm, d_model_p)      native dtype tile of token rows
    # w1_ref: (d_ff_p, d_model_p)  bf16, resident in VMEM (constant index_map)
    # b1_ref: (1, d_ff_p)          f32
    # w2_ref: (d_ff_p, d_model_p)  bf16, resident in VMEM
    # b2_ref: (1, d_model_p)       f32
    # o_ref:  (tm, d_model_p)
    # acc_ref:(tm, d_model_p)      f32 accumulator scratch
    x = x_ref[...].astype(w1_ref.dtype)                     # in-kernel cast to bf16
    acc_ref[...] = jnp.broadcast_to(b2_ref[...], acc_ref.shape)   # init with b2

    def body(c, carry):
        off = pl.multiple_of(c * tk_inner, tk_inner)
        w1c = w1_ref[pl.ds(off, tk_inner), :]                # contiguous row slice
        # First projection for this d_ff sub-chunk, f32 accumulation on the MXU.
        h = lax.dot_general(x, w1c, (((1,), (1,)), ((), ())),
                            preferred_element_type=jnp.float32)
        h = jnp.maximum(h + b1_ref[:, pl.ds(off, tk_inner)], 0.0)
        # TODO(synk): dropout omitted (identity at inference / eval mode).
        acc_ref[...] += jnp.dot(h.astype(w2_ref.dtype),
                                w2_ref[pl.ds(off, tk_inner), :],
                                preferred_element_type=jnp.float32)
        return carry

    lax.fori_loop(0, n_chunks, body, 0, unroll=True)
    o_ref[...] = acc_ref[...].astype(o_ref.dtype)


def _ffn_streamed_kernel(x_ref, w1_ref, b1_ref, w2_ref, b2_ref, o_ref, acc_ref,
                         *, tk_inner, n_chunks):
    # x_ref:  (tm, d_model_p)    resident across the k axis (index_map depends on i only)
    # w1_ref: (tk, d_model_p)    bf16 chunk of W1 rows (contiguous DMA)
    # b1_ref: (1, tk)            f32 chunk of b1
    # w2_ref: (tk, d_model_p)    bf16 chunk of W2 rows (contiguous DMA)
    # b2_ref: (1, d_model_p)     f32
    # o_ref / acc_ref: (tm, d_model_p)
    k = pl.program_id(1)

    @pl.when(k == 0)
    def _():
        acc_ref[...] = jnp.broadcast_to(b2_ref[...], acc_ref.shape)   # init with b2

    x = x_ref[...].astype(w1_ref.dtype)

    def body(c, carry):
        off = pl.multiple_of(c * tk_inner, tk_inner)
        w1c = w1_ref[pl.ds(off, tk_inner), :]
        h = lax.dot_general(x, w1c, (((1,), (1,)), ((), ())),
                            preferred_element_type=jnp.float32)
        h = jnp.maximum(h + b1_ref[:, pl.ds(off, tk_inner)], 0.0)
        # TODO(synk): dropout omitted (identity at inference / eval mode).
        acc_ref[...] += jnp.dot(h.astype(w2_ref.dtype),
                                w2_ref[pl.ds(off, tk_inner), :],
                                preferred_element_type=jnp.float32)
        return carry

    lax.fori_loop(0, n_chunks, body, 0, unroll=True)

    @pl.when(k == pl.num_programs(1) - 1)
    def _():
        o_ref[...] = acc_ref[...].astype(o_ref.dtype)


# ---------------------------------------------------------------------------
# Wrapper
# ---------------------------------------------------------------------------

def prepare_ffn_weights(w1, b1, w2, b2, *, compute_dtype=jnp.bfloat16):
    """Pre-cast & zero-pad the weights ONCE at model load (hoisted out of the call path).

    w1: (d_ff, d_model)   == ff_1.weight (PyTorch layout)
    w2: (d_model, d_ff)   == ff_2.weight (PyTorch layout)
    Returns (w1p, b1p, w2p, b2p) with both weight matrices in (d_ff_p, d_model_p) layout,
    so d_ff chunks are contiguous row slices. Zero padding is exact for the valid region.
    """
    d_ff, d_model = w1.shape
    d_model_p = _round_up(d_model, 128)
    d_ff_p = _round_up(d_ff, 128)
    w1p = jnp.pad(w1.astype(compute_dtype),
                  ((0, d_ff_p - d_ff), (0, d_model_p - d_model)))
    w2p = jnp.pad(w2.T.astype(compute_dtype),
                  ((0, d_ff_p - d_ff), (0, d_model_p - d_model)))
    b1p = jnp.pad(b1.astype(jnp.float32).reshape(1, d_ff),
                  ((0, 0), (0, d_ff_p - d_ff)))
    b2p = jnp.pad(b2.astype(jnp.float32).reshape(1, d_model),
                  ((0, 0), (0, d_model_p - d_model)))
    return w1p, b1p, w2p, b2p


@functools.partial(jax.jit, static_argnames=("tm", "tk", "tk_inner"))
def feed_forward(x, w1p, b1p, w2p, b2p, *, tm=512, tk=512, tk_inner=256):
    """x: (B, S, d_model) in its native dtype. Weights from prepare_ffn_weights()."""
    B, S, d_model = x.shape
    d_ff_p, d_model_p = w1p.shape
    out_dtype = x.dtype
    M = B * S

    x_isz = jnp.dtype(x.dtype).itemsize
    o_isz = jnp.dtype(out_dtype).itemsize
    w_isz = jnp.dtype(w1p.dtype).itemsize

    # Row tile (sublane aligned), clamped for tiny inputs.
    tm_e = min(tm, _round_up(M, 8))
    M_p = _round_up(M, tm_e)
    n_row_tiles = M_p // tm_e

    # Inner d_ff sub-chunk: bounds h's live range so the two matmuls pipeline.
    tk_inner_e = tk_inner if (tk_inner >= 128 and d_ff_p % tk_inner == 0) else 128

    # Pad x only if misaligned; keep native dtype (cast happens inside the kernel).
    x2 = x.reshape(M, d_model)
    if (M_p, d_model_p) != (M, d_model):
        x2 = jnp.pad(x2, ((0, M_p - M), (0, d_model_p - d_model)))

    vmem_limit = _vmem_limit_bytes()

    # Resident fast path if (double-buffered) weights + per-tile activation blocks fit.
    weight_bytes = 2 * d_ff_p * d_model_p * w_isz + d_ff_p * 4 + d_model_p * 4
    per_tile_bytes = tm_e * d_model_p * (2 * x_isz + 2 * o_isz + 4)  # x, out (2-buf) + f32 acc
    use_resident = 2 * weight_bytes + per_tile_bytes <= int(0.7 * vmem_limit)

    flops = 2 * 2 * M_p * d_model_p * d_ff_p

    if use_resident:
        grid = (n_row_tiles,)
        kernel = functools.partial(_ffn_resident_kernel, tk_inner=tk_inner_e,
                                   n_chunks=d_ff_p // tk_inner_e)
        in_specs = [
            pl.BlockSpec((tm_e, d_model_p), lambda i: (i, 0)),       # x rows
            pl.BlockSpec((d_ff_p, d_model_p), lambda i: (0, 0)),     # W1 (resident)
            pl.BlockSpec((1, d_ff_p), lambda i: (0, 0)),             # b1 (resident)
            pl.BlockSpec((d_ff_p, d_model_p), lambda i: (0, 0)),     # W2 (resident)
            pl.BlockSpec((1, d_model_p), lambda i: (0, 0)),          # b2 (resident)
        ]
        out_specs = pl.BlockSpec((tm_e, d_model_p), lambda i: (i, 0))
        dim_sem = ("parallel",)
        bytes_accessed = M_p * d_model_p * (x_isz + o_isz) + weight_bytes
    else:
        # Streamed fallback: d_ff chunk that divides d_ff_p (d_ff_p is a multiple of 128).
        tk_e = tk
        while tk_e > 128 and d_ff_p % tk_e != 0:
            tk_e //= 2
        tk_e = max(tk_e, 128)
        tk_inner_s = min(tk_inner_e, tk_e)
        grid = (n_row_tiles, d_ff_p // tk_e)
        kernel = functools.partial(_ffn_streamed_kernel, tk_inner=tk_inner_s,
                                   n_chunks=tk_e // tk_inner_s)
        in_specs = [
            pl.BlockSpec((tm_e, d_model_p), lambda i, k: (i, 0)),    # x rows (resident over k)
            pl.BlockSpec((tk_e, d_model_p), lambda i, k: (k, 0)),    # W1 row chunk (contiguous)
            pl.BlockSpec((1, tk_e), lambda i, k: (0, k)),            # b1 chunk
            pl.BlockSpec((tk_e, d_model_p), lambda i, k: (k, 0)),    # W2 row chunk (contiguous)
            pl.BlockSpec((1, d_model_p), lambda i, k: (0, 0)),       # b2
        ]
        out_specs = pl.BlockSpec((tm_e, d_model_p), lambda i, k: (i, 0))
        dim_sem = ("parallel", "arbitrary")
        # Weights really are re-streamed once per row tile in this path.
        bytes_accessed = M_p * d_model_p * (x_isz + o_isz) + n_row_tiles * weight_bytes

    cost = pl.CostEstimate(flops=flops, transcendentals=0,
                           bytes_accessed=int(bytes_accessed))

    out2 = pl.pallas_call(
        kernel,
        out_shape=jax.ShapeDtypeStruct((M_p, d_model_p), out_dtype),
        grid_spec=pltpu.PrefetchScalarGridSpec(
            num_scalar_prefetch=0,
            grid=grid,
            in_specs=in_specs,
            out_specs=out_specs,
            scratch_shapes=[pltpu.VMEM((tm_e, d_model_p), jnp.float32)],
        ),
        compiler_params=pltpu.CompilerParams(
            dimension_semantics=dim_sem,
            vmem_limit_bytes=vmem_limit,
        ),
        cost_estimate=cost,
    )(x2, w1p, b1p, w2p, b2p)

    return out2[:M, :d_model].reshape(B, S, d_model)


# ---------------------------------------------------------------------------
# Demo / self-test
# ---------------------------------------------------------------------------

def _init_linear(key, in_features, out_features, dtype=jnp.float32):
    # Mimic nn.Linear default init: U(-1/sqrt(in), 1/sqrt(in)); PyTorch weight layout.
    kw, kb = jax.random.split(key)
    bound = 1.0 / (in_features ** 0.5)
    w = jax.random.uniform(kw, (out_features, in_features), dtype, -bound, bound)
    b = jax.random.uniform(kb, (out_features,), dtype, -bound, bound)
    return w, b


if __name__ == "__main__":
    B, S, d_model, d_ff = 2, 8, 32, 64

    key = jax.random.PRNGKey(0)
    kx, k1, k2 = jax.random.split(key, 3)

    x = jax.random.normal(kx, (B, S, d_model), jnp.float32)
    w1, b1 = _init_linear(k1, d_model, d_ff)    # ff_1.weight: (d_ff, d_model)
    w2, b2 = _init_linear(k2, d_ff, d_model)    # ff_2.weight: (d_model, d_ff)

    # Weight cast/pad happens once, at "model load".
    params = prepare_ffn_weights(w1, b1, w2, b2)

    out = feed_forward(x, *params)
    jax.block_until_ready(out)
    assert out.shape == (B, S, d_model)

    # Reference emulating the kernel's bf16 compute / f32 accumulate path.
    bf = jnp.bfloat16
    h = jnp.dot(x.astype(bf), w1.astype(bf).T, preferred_element_type=jnp.float32) + b1
    h = jnp.maximum(h, 0.0)
    ref_bf = jnp.dot(h.astype(bf), w2.astype(bf).T,
                     preferred_element_type=jnp.float32) + b2
    assert jnp.allclose(out, ref_bf.astype(out.dtype), atol=2e-2, rtol=2e-2), \
        float(jnp.max(jnp.abs(out - ref_bf)))

    # Loose check against the pure-f32 PyTorch-equivalent math
    # (bf16 weights/activations introduce ~1e-2-level deviation, as expected).
    ref_f32 = jnp.maximum(x @ w1.T + b1, 0.0) @ w2.T + b2
    assert jnp.allclose(out, ref_f32, atol=5e-2, rtol=5e-2), \
        float(jnp.max(jnp.abs(out - ref_f32)))

    print("KERNEL_OK")
</pallas_src>

<mosaic_0001>
module attributes {stable_mosaic.version = 11 : i64} {
  func.func @_ffn_resident_kernel(%arg0: i32, %arg1: memref<16x128xf32, #tpu.memory_space<vmem>>, %arg2: memref<128x128xbf16, #tpu.memory_space<vmem>>, %arg3: memref<1x128xf32, #tpu.memory_space<vmem>>, %arg4: memref<128x128xbf16, #tpu.memory_space<vmem>>, %arg5: memref<1x128xf32, #tpu.memory_space<vmem>>, %arg6: memref<16x128xf32, #tpu.memory_space<vmem>>, %arg7: memref<16x128xf32, #tpu.memory_space<vmem>>) attributes {dimension_semantics = [#tpu.dimension_semantics<parallel>], iteration_bounds = array<i64: 1>, scalar_prefetch = 0 : i64, scratch_operands = 1 : i64, tpu.core_type = #tpu.core_type<tc>, window_params = [{transform_indices = @transform_0, window_bounds = array<i64: 16, 128>}, {pipeline_mode = #tpu.pipeline_mode<synchronous>, transform_indices = @transform_1, window_bounds = array<i64: 128, 128>}, {pipeline_mode = #tpu.pipeline_mode<synchronous>, transform_indices = @transform_2, window_bounds = array<i64: 1, 128>}, {pipeline_mode = #tpu.pipeline_mode<synchronous>, transform_indices = @transform_3, window_bounds = array<i64: 128, 128>}, {pipeline_mode = #tpu.pipeline_mode<synchronous>, transform_indices = @transform_4, window_bounds = array<i64: 1, 128>}, {transform_indices = @transform_5, window_bounds = array<i64: 16, 128>}]} {
    %c0 = arith.constant 0 : index
    %c0_0 = arith.constant 0 : index
    %0 = vector.load %arg1[%c0, %c0_0] : memref<16x128xf32, #tpu.memory_space<vmem>>, vector<16x128xf32>
    %1 = arith.truncf %0 : vector<16x128xf32> to vector<16x128xbf16>
    %c0_1 = arith.constant 0 : index
    %c0_2 = arith.constant 0 : index
    %2 = vector.load %arg5[%c0_1, %c0_2] : memref<1x128xf32, #tpu.memory_space<vmem>>, vector<1x128xf32>
    %3 = vector.shape_cast %2 : vector<1x128xf32> to vector<1x128xf32>
    %4 = vector.broadcast %3 : vector<1x128xf32> to vector<16x128xf32>
    %c0_3 = arith.constant 0 : index
    %c0_4 = arith.constant 0 : index
    %5 = vector.load %arg7[%c0_3, %c0_4] : memref<16x128xf32, #tpu.memory_space<vmem>>, vector<16x128xf32>
    tpu.vector_store %arg7[%c0_3, %c0_4], %4 {strides = array<i32>} : memref<16x128xf32, #tpu.memory_space<vmem>>, vector<16x128xf32>,
    %c0_i32 = arith.constant 0 : i32
    %c128_i32 = arith.constant 128 : i32
    %6 = arith.muli %c0_i32, %c128_i32 : i32
    %7 = tpu.assume_multiple %6, 128 : i32
    %8 = arith.index_cast %7 : i32 to index
    %c0_5 = arith.constant 0 : index
    %9 = vector.load %arg2[%8, %c0_5] : memref<128x128xbf16, #tpu.memory_space<vmem>>, vector<128x128xbf16>
    %cst = arith.constant dense<0.000000e+00> : vector<16x128xf32>
    %10 = tpu.matmul %1, %9, %cst {dimension_numbers = #tpu.dot_dimension_numbers<[1], [1], [0], [0], [0, 0, 1, 0], [], []>} : vector<16x128xbf16>, vector<128x128xbf16>, vector<16x128xf32> -> vector<16x128xf32>
    %c0_6 = arith.constant 0 : index
    %11 = arith.index_cast %7 : i32 to index
    %12 = vector.load %arg3[%c0_6, %11] : memref<1x128xf32, #tpu.memory_space<vmem>>, vector<1x128xf32>
    %13 = vector.broadcast %12 : vector<1x128xf32> to vector<16x128xf32>
    %14 = arith.addf %10, %13 : vector<16x128xf32>
    %cst_7 = arith.constant 0.000000e+00 : f32
    %15 = vector.broadcast %cst_7 : f32 to vector<16x128xf32>
    %16 = arith.maximumf %14, %15 : vector<16x128xf32>
    %c0_8 = arith.constant 0 : index
    %c0_9 = arith.constant 0 : index
    %17 = vector.load %arg7[%c0_8, %c0_9] : memref<16x128xf32, #tpu.memory_space<vmem>>, vector<16x128xf32>
    %18 = arith.truncf %16 : vector<16x128xf32> to vector<16x128xbf16>
    %19 = arith.index_cast %7 : i32 to index
    %c0_10 = arith.constant 0 : index
    %20 = vector.load %arg4[%19, %c0_10] : memref<128x128xbf16, #tpu.memory_space<vmem>>, vector<128x128xbf16>
    %cst_11 = arith.constant dense<0.000000e+00> : vector<16x128xf32>
    %21 = tpu.matmul %18, %20, %cst_11 {dimension_numbers = #tpu.dot_dimension_numbers<[1], [0], [0], [1], [0, 0, 1, 1], [], []>} : vector<16x128xbf16>, vector<128x128xbf16>, vector<16x128xf32> -> vector<16x128xf32>
    %22 = arith.addf %17, %21 : vector<16x128xf32>
    %c0_12 = arith.constant 0 : index
    %c0_13 = arith.constant 0 : index
    %23 = vector.load %arg7[%c0_12, %c0_13] : memref<16x128xf32, #tpu.memory_space<vmem>>, vector<16x128xf32>
    tpu.vector_store %arg7[%c0_12, %c0_13], %22 {strides = array<i32>} : memref<16x128xf32, #tpu.memory_space<vmem>>, vector<16x128xf32>,
    %c1_i32 = arith.constant 1 : i32
    %c0_14 = arith.constant 0 : index
    %c0_15 = arith.constant 0 : index
    %24 = vector.load %arg7[%c0_14, %c0_15] : memref<16x128xf32, #tpu.memory_space<vmem>>, vector<16x128xf32>
    %c0_16 = arith.constant 0 : index
    %c0_17 = arith.constant 0 : index
    %25 = vector.load %arg6[%c0_16, %c0_17] : memref<16x128xf32, #tpu.memory_space<vmem>>, vector<16x128xf32>
    tpu.vector_store %arg6[%c0_16, %c0_17], %24 {strides = array<i32>} : memref<16x128xf32, #tpu.memory_space<vmem>>, vector<16x128xf32>,
    return
  }
  func.func @transform_0(%arg0: i32) -> (i32, i32) {
    %c0_i32 = arith.constant 0 : i32
    %c0_i32_0 = arith.constant 0 : i32
    return %arg0, %c0_i32 : i32, i32
  }
  func.func @transform_1(%arg0: i32) -> (i32, i32) {
    %c0_i32 = arith.constant 0 : i32
    %c0_i32_0 = arith.constant 0 : i32
    %c0_i32_1 = arith.constant 0 : i32
    return %c0_i32, %c0_i32_0 : i32, i32
  }
  func.func @transform_2(%arg0: i32) -> (i32, i32) {
    %c0_i32 = arith.constant 0 : i32
    %c0_i32_0 = arith.constant 0 : i32
    %c0_i32_1 = arith.constant 0 : i32
    return %c0_i32, %c0_i32_0 : i32, i32
  }
  func.func @transform_3(%arg0: i32) -> (i32, i32) {
    %c0_i32 = arith.constant 0 : i32
    %c0_i32_0 = arith.constant 0 : i32
    %c0_i32_1 = arith.constant 0 : i32
    return %c0_i32, %c0_i32_0 : i32, i32
  }
  func.func @transform_4(%arg0: i32) -> (i32, i32) {
    %c0_i32 = arith.constant 0 : i32
    %c0_i32_0 = arith.constant 0 : i32
    %c0_i32_1 = arith.constant 0 : i32
    return %c0_i32, %c0_i32_0 : i32, i32
  }
  func.func @transform_5(%arg0: i32) -> (i32, i32) {
    %c0_i32 = arith.constant 0 : i32
    %c0_i32_0 = arith.constant 0 : i32
    return %arg0, %c0_i32 : i32, i32
  }
}

</mosaic_0001>

<bundles_post_ra>
// kernel: feed_forward.1
= control target key start
LH: loop header
LB: loop body
LE: loop exit
PB: predicated region body
PF: predicated region fallthrough
CT: control target
= control target key end

     0   :  { %10 = vsyncpa [#allocation4], 0  ;;  %s521_s0 = inlined_call_operand.vmem [shape: f32[16,128], index: 0, kind: input, shape index: {}]   ;;  %s522_s1 = inlined_call_operand.hbm [shape: bf16[128,128], index: 1, kind: input, shape index: {}]   ;;  %s523_s2 = inlined_call_operand.vmem [shape: f32[1,128], index: 2, kind: input, shape index: {}]   ;;  %s524_s3 = inlined_call_operand.hbm [shape: bf16[128,128], index: 3, kind: input, shape index: {}]   ;;  %s525_s4 = inlined_call_operand.vmem [shape: f32[1,128], index: 4, kind: input, shape index: {}]   ;;  %s526_s5 = inlined_call_operand.vmem [shape: f32[16,128], index: 5, kind: output, shape index: {}]  }
   0x1   :  { %11 = vsyncpa [#allocation6], 0  ;;  %s443_s18 = smov [#allocation3]   ;;  %s395_s22 = scalar_lea.hbm %s522_s1, 1024 }
   0x2   :  { %s19_s19 = sshll.u32 %s443_s18, 4  ;;  %p396_p0 = scmp.ne.s32.totalorder %s522_s1, %s395_s22  ;;  %s20_s19 = int_to_ptr.vmem [resolvable:$true] %s19_s19 }
   0x3   :  { %p399_p1 = scmp.lt.u32.totalorder %s395_s22, %s522_s1 }
   0x5   :  { %p401_p2 = pnand %p399_p1, %p396_p0 }
   0x7   :  { %404 = shalt.err (!%p401_p2)
}
   0x8   :  { %s405_s27 = scalar_lea.vmem %s20_s19, 1024  ;;  %p410_p4 = scmp.lt.s32.totalorder %s20_s19, %s20_s19 }
   0x9   :  { %p406_p3 = scmp.ne.s32.totalorder %s20_s19, %s405_s27  ;;  %p411_p5 = scmp.lt.s32.totalorder %s405_s27, %s405_s27 }
   0xb   :  { %p412_p6 = por %p411_p5, %p410_p4 }
   0xd   :  { %p413_p7 = pnand %p412_p6, %p406_p3 }
   0xf   :  { %416 = shalt.err (!%p413_p7)
}
  0x10   :  { %s444_s28 = smov 64   ;;  %s445_s29 = smov 4  }
  0x11   :  { %25 = dma.hbm_to_vmem [thread:$0]  %s522_s1, 1024, %s20_s19, [#allocation4], %s444_s28, %s444_s28, %s445_s29  }
  0x12   :  { %s446_s7 = smov [#allocation5]   ;;  %s417_s11 = scalar_lea.hbm %s524_s3, 1024 }
  0x13   :  { %s33_s8 = sshll.u32 %s446_s7, 4  ;;  %p418_p8 = scmp.ne.s32.totalorder %s524_s3, %s417_s11  ;;  %s34_s8 = int_to_ptr.vmem [resolvable:$true] %s33_s8 }
  0x14   :  { %p421_p9 = scmp.lt.u32.totalorder %s417_s11, %s524_s3 }
  0x16   :  { %p423_p10 = pnand %p421_p9, %p418_p8 }
  0x18   :  { %426 = shalt.err (!%p423_p10)
}
  0x19   :  { %s427_s16 = scalar_lea.vmem %s34_s8, 1024  ;;  %p432_p12 = scmp.lt.s32.totalorder %s34_s8, %s34_s8 }
  0x1a   :  { %p428_p11 = scmp.ne.s32.totalorder %s34_s8, %s427_s16  ;;  %p433_p13 = scmp.lt.s32.totalorder %s427_s16, %s427_s16 }
  0x1c   :  { %p434_p0 = por %p433_p13, %p432_p12 }
  0x1e   :  { %p435_p1 = pnand %p434_p0, %p428_p11 }
  0x20   :  { %438 = shalt.err (!%p435_p1)
}
  0x21   :  { %39 = dma.hbm_to_vmem [thread:$0]  %s524_s3, 1024, %s34_s8, [#allocation6], %s444_s28, %s444_s28, %s445_s29  }
  0x22   :  { %439 = dma.done.wait [#allocation4], 1024  }
  0x23   :  { %440 = vsyncadd [#allocation4], 4294966272 }
  0x24   :  { %441 = dma.done.wait [#allocation6], 1024  }
  0x25   :  { %442 = vsyncadd [#allocation6], 4294966272  ;;  %v447_v0 = vmov 0.0   ;;  %vm448_vm0 = vmmov 0   ;;  %v379_v1 = vld [vmem:[#allocation3] sm:$0xff]   ;;  %v380_v2 = vld [vmem:[#allocation3 + $0x8] sm:$0xff]  }
  0x26   :  { %333 = vmatprep.subr.bf16.mxu0 %v447_v0  ;;  %349 = vmatprep.mubr.msk.bf16.mxu0 %vm448_vm0, %v447_v0  ;;  %v387_v3 = vld [vmem:[#allocation5] sm:$0xff]   ;;  %v388_v4 = vld [vmem:[#allocation5 + $0x8] sm:$0xff]   ;;  %v381_v5 = vld [vmem:[#allocation3 + $0x10] sm:$0xff]  }
  0x27   :  { %353 = vmatprep.subr.bf16.mxu1 %v447_v0  ;;  %369 = vmatprep.mubr.msk.bf16.mxu1 %vm448_vm0, %v447_v0  ;;  %v389_v6 = vld [vmem:[#allocation5 + $0x10] sm:$0xff]   ;;  %v390_v7 = vld [vmem:[#allocation5 + $0x18] sm:$0xff]   ;;  %v391_v9 = vld [vmem:[#allocation5 + $0x20] sm:$0xff]  }
  0x28   :  { %334 = vmatpush3.bf16.xpose.msra.mxu0 %v379_v1  ;;  %354 = vmatpush3.bf16.msra.mxu1 %v387_v3  ;;  %v382_v8 = vld [vmem:[#allocation3 + $0x18] sm:$0xff]   ;;  %v392_v10 = vld [vmem:[#allocation5 + $0x28] sm:$0xff]   ;;  %v383_v11 = vld [vmem:[#allocation3 + $0x20] sm:$0xff]  }
  0x29   :  { %335 = vmatprep.subr.bf16.mxu0 %v447_v0  ;;  %355 = vmatprep.subr.bf16.mxu1 %v447_v0  ;;  %v384_v12 = vld [vmem:[#allocation3 + $0x28] sm:$0xff]   ;;  %v385_v13 = vld [vmem:[#allocation3 + $0x30] sm:$0xff]   ;;  %v386_v14 = vld [vmem:[#allocation3 + $0x38] sm:$0xff]  }
  0x2a   :  { %v49_v15 = vld [vmem:[%s521_s0] sm:$0xff]  ;;  %v50_v16 = vld [vmem:[%s521_s0 + $0x8] sm:$0xff]  ;;  %v393_v18 = vld [vmem:[#allocation5 + $0x30] sm:$0xff]  }
  0x2b   :  { %v51_v17 = vpack.c.bf16 %v50_v16, %v49_v15  ;;  %v394_v19 = vld [vmem:[#allocation5 + $0x38] sm:$0xff]   ;;  %v298_v20 = vld [vmem:[%s523_s2] ss:$0 sm:$0xff] }
  0x2c   :  { %356 = vmatpush3.bf16.msra.mxu1 %v388_v4  ;;  %v297_v30 = vld [vmem:[%s525_s4] ss:$0 sm:$0xff] }
  0x2d   :  { %357 = vmatprep.subr.bf16.mxu1 %v447_v0 }
  0x30   :  { %336 = vmatpush3.bf16.xpose.msra.mxu0 %v380_v2  ;;  %358 = vmatpush3.bf16.msra.mxu1 %v389_v6 }
  0x31   :  { %337 = vmatprep.subr.bf16.mxu0 %v447_v0  ;;  %359 = vmatprep.subr.bf16.mxu1 %v447_v0 }
  0x34   :  { %360 = vmatpush3.bf16.msra.mxu1 %v390_v7 }
  0x35   :  { %361 = vmatprep.subr.bf16.mxu1 %v447_v0 }
  0x38   :  { %338 = vmatpush3.bf16.xpose.msra.mxu0 %v381_v5  ;;  %362 = vmatpush3.bf16.msra.mxu1 %v391_v9 }
  0x39   :  { %339 = vmatprep.subr.bf16.mxu0 %v447_v0  ;;  %363 = vmatprep.subr.bf16.mxu1 %v447_v0 }
  0x3c   :  { %364 = vmatpush3.bf16.msra.mxu1 %v392_v10 }
  0x3d   :  { %365 = vmatprep.subr.bf16.mxu1 %v447_v0 }
  0x40   :  { %340 = vmatpush3.bf16.xpose.msra.mxu0 %v382_v8  ;;  %366 = vmatpush3.bf16.msra.mxu1 %v393_v18 }
  0x41   :  { %341 = vmatprep.subr.bf16.mxu0 %v447_v0  ;;  %367 = vmatprep.subr.bf16.mxu1 %v447_v0 }
  0x44   :  { %368 = vmatpush3.bf16.msra.mxu1 %v394_v19 }
  0x48   :  { %342 = vmatpush3.bf16.xpose.msra.mxu0 %v383_v11 }
  0x49   :  { %343 = vmatprep.subr.bf16.mxu0 %v447_v0 }
  0x50   :  { %344 = vmatpush3.bf16.xpose.msra.mxu0 %v384_v12 }
  0x51   :  { %345 = vmatprep.subr.bf16.mxu0 %v447_v0 }
  0x58   :  { %346 = vmatpush3.bf16.xpose.msra.mxu0 %v385_v13 }
  0x59   :  { %347 = vmatprep.subr.bf16.mxu0 %v447_v0 }
  0x60   :  { %348 = vmatpush3.bf16.xpose.msra.mxu0 %v386_v14 }
  0x67   :  { %350 = vmatmul.mubr.bf16.vlgmr.msra.gmra.mrb[0].mxu0 %v51_v17 }
 0x13a   :  { %v166_v21 = vpop.f32.mrb[0].mxu0 }
 0x13b   :  { %v167_v22 = vadd.f32 %v298_v20, %v166_v21  ;;  %v351_v23 = vpop.f32.mrb[1].mxu0 }
 0x13c   :  { %v169_v24 = vpop.f32.mrb[2].mxu0 }
 0x13d   :  { %v170_v25 = vadd.f32 %v298_v20, %v169_v24  ;;  %v352_v26 = vpop.f32.mrb[3].mxu0  ;;  %v173_v27 = vmax.f32 %v167_v22, 0.0 }
 0x13f   :  { %v174_v28 = vmax.f32 %v170_v25, 0.0 }
 0x141   :  { %v177_v29 = vpack.c.bf16 %v174_v28, %v173_v27 }
 0x143   :  { %370 = vmatmul.mubr.bf16.vlgmr.msra.gmra.mrb[0].mxu1 %v177_v29 }
 0x216   :  { %v276_v31 = vpop.f32.mrb[0].mxu1 }
 0x217   :  { %v283_v32 = vadd.f32 %v297_v30, %v276_v31  ;;  %v371_v33 = vpop.f32.mrb[1].mxu1 }
 0x218   :  { %v279_v34 = vpop.f32.mrb[2].mxu1 }
 0x219   :  { %289 = vst [vmem:[%s526_s5] sm:$0xff] %v283_v32  ;;  %v284_v35 = vadd.f32 %v297_v30, %v279_v34  ;;  %v372_v36 = vpop.f32.mrb[3].mxu1 }
 0x21b   :  { %290 = vst [vmem:[%s526_s5 + $0x8] sm:$0xff] %v284_v35 }
 0x21c   :  { %295 = vsyncpa [#allocation4], 1 }
 0x21d   :  { %296 = vsyncpa [#allocation6], 1 }

</bundles_post_ra>
